<compile_context>
chip_gen: v7x
topology: tpu7x:2x2x1
jax: 0.10.0
libtpu: 0.0.40
codegen_flags: <defaults>
</compile_context>

<pallas_src>
import functools

import jax
import jax.numpy as jnp
from jax import lax
from jax.experimental import pallas as pl
from jax.experimental.pallas import tpu as pltpu


def _round_up(x, m):
    return ((x + m - 1) // m) * m


def _ce_kernel(logits_ref, xt_ref, valid_ref, sum_ref, cnt_ref, m_ref, s_ref, *rest,
               num_classes, class_tile, chunk_w, label_smoothing, needs_class_mask):
    smoothing = label_smoothing > 0.0
    sx_ref = rest[0] if smoothing else None
    c = pl.program_id(1)
    n_chunks = class_tile // chunk_w

    @pl.when(c == 0)
    def _init():
        m_ref[...] = jnp.full_like(m_ref, jnp.float32(-1e30))
        s_ref[...] = jnp.zeros_like(s_ref)
        if smoothing:
            sx_ref[...] = jnp.zeros_like(sx_ref)

    if needs_class_mask:
        lane = lax.broadcasted_iota(jnp.int32, (1, chunk_w), 1)
        base = c * class_tile

    def chunk(j):
        """Load 128-lane chunk j as f32 plus its class-validity mask (or None)."""
        x = logits_ref[:, j * chunk_w:(j + 1) * chunk_w].astype(jnp.float32)
        if needs_class_mask:
            ok = (base + j * chunk_w + lane) < num_classes        # (1, chunk_w)
            return x, ok
        return x, None

    # ---- pass 1: per-lane running max (pure VPU, no cross-lane work) ----
    m_old = m_ref[...]
    m_new = m_old
    for j in range(n_chunks):
        x, ok = chunk(j)
        if ok is not None:
            x = jnp.where(ok, x, jnp.float32(-1e30))   # NaN-safe masking of OOB lanes
        m_new = jnp.maximum(m_new, x)
    m_ref[...] = m_new

    # ---- pass 2: per-lane exp-sum (and per-lane sum(x) for label smoothing) ----
    s_acc = s_ref[...] * jnp.exp(m_old - m_new)
    sx_acc = sx_ref[...] if smoothing else None
    for j in range(n_chunks):
        x, ok = chunk(j)
        xm = jnp.where(ok, x, jnp.float32(-1e30)) if ok is not None else x
        s_acc = s_acc + jnp.exp(xm - m_new)
        if smoothing:
            xs = jnp.where(ok, x, jnp.float32(0.0)) if ok is not None else x
            sx_acc = sx_acc + xs
    s_ref[...] = s_acc
    if smoothing:
        sx_ref[...] = sx_acc

    @pl.when(c == pl.num_programs(1) - 1)
    def _finalize():
        # Single 128 -> 1 cross-lane combine per row tile.
        m_lane = m_ref[...]                                          # (rt, cw)
        m_row = jnp.max(m_lane, axis=-1, keepdims=True)              # (rt, 1)
        s_row = jnp.sum(s_ref[...] * jnp.exp(m_lane - m_row),
                        axis=-1, keepdims=True)                      # (rt, 1)
        lse = m_row + jnp.log(s_row)
        nll = lse - xt_ref[...]                                      # -log p[target]
        if smoothing:
            sx_row = jnp.sum(sx_ref[...], axis=-1, keepdims=True)
            smooth = lse - sx_row * jnp.float32(1.0 / num_classes)
            per_row = (jnp.float32(1.0 - label_smoothing) * nll
                       + jnp.float32(label_smoothing) * smooth)
        else:
            per_row = nll
        valid = valid_ref[...]                  # (rt, 1); 0 on ignored and padded rows
        psum = jnp.sum(jnp.where(valid > 0.5, per_row, jnp.float32(0.0)))
        pcnt = jnp.sum(valid)
        sum_ref[...] = jnp.full(sum_ref.shape, psum, dtype=jnp.float32)
        cnt_ref[...] = jnp.full(cnt_ref.shape, pcnt, dtype=jnp.float32)


def attention_loss(logits, targets, *, ignore_index=0, label_smoothing=0.0,
                   row_tile=None, max_class_tile=2048):
    """logits: (B, T, C) float (f32/bf16); targets: (B, T) int. -> scalar f32."""
    B, T, C = logits.shape
    N = B * T
    logits_flat = logits.reshape(N, C)                 # keep native dtype (bf16 ok)
    targets_flat = targets.reshape(N).astype(jnp.int32)

    # O(N) precompute (negligible vs the (N, C) stream): x[target] and valid mask.
    gather_idx = jnp.clip(targets_flat, 0, C - 1)[:, None]
    xt = jnp.take_along_axis(logits_flat, gather_idx, axis=-1).astype(jnp.float32)  # (N,1)
    valid = (targets_flat != ignore_index).astype(jnp.float32)[:, None]             # (N,1)

    # -------- generation-aware budgets --------
    try:
        vmem_cap = int(pltpu.get_tpu_info().vmem_capacity_bytes)
    except Exception:
        vmem_cap = 64 * 1024 * 1024
    big_vmem = vmem_cap >= 96 * 1024 * 1024            # v5e/v6e: 128 MiB, v7x: 64 MiB
    block_budget = (8 if big_vmem else 4) * 1024 * 1024
    row_cap = 2048 if big_vmem else 1024
    vmem_limit = min(vmem_cap * 3 // 4, 128 * 1024 * 1024)

    # -------- class-axis tiling (multiple of 128, never exceeds C) --------
    if C < 128:
        c_tile = C                                     # block last dim == full dim
    else:
        max_cl = max(128, (int(max_class_tile) // 128) * 128)
        c_tile = min(max_cl, (C // 128) * 128)
    chunk_w = min(128, c_tile)
    num_c_tiles = pl.cdiv(C, c_tile)
    needs_class_mask = (num_c_tiles * c_tile != C)     # ragged tail class tile

    # -------- row-axis tiling --------
    bytes_per_el = logits.dtype.itemsize
    if row_tile is None:
        row_tile = block_budget // max(1, c_tile * bytes_per_el)
    row_tile = max(8, min(int(row_tile), row_cap))
    if N >= 8:
        rt = min(_round_up(row_tile, 8), (N // 8) * 8)
    else:
        rt = N
    num_row_tiles = pl.cdiv(N, rt)
    N_pad = num_row_tiles * rt
    if N_pad != N:
        # Pad ONLY the tiny (N,1) per-row arrays (cheap); the logits tail row block
        # is read ragged and masked via valid == 0.
        xt = jnp.pad(xt, ((0, N_pad - N), (0, 0)))
        valid = jnp.pad(valid, ((0, N_pad - N), (0, 0)))

    kernel = functools.partial(
        _ce_kernel,
        num_classes=C, class_tile=c_tile, chunk_w=chunk_w,
        label_smoothing=float(label_smoothing),
        needs_class_mask=needs_class_mask)

    scratch = [pltpu.VMEM((rt, chunk_w), jnp.float32),      # per-lane running max
               pltpu.VMEM((rt, chunk_w), jnp.float32)]      # per-lane running sum-exp
    if label_smoothing > 0.0:
        scratch.append(pltpu.VMEM((rt, chunk_w), jnp.float32))  # per-lane sum(x)

    partial_sum, partial_cnt = pl.pallas_call(
        kernel,
        out_shape=(
            jax.ShapeDtypeStruct((num_row_tiles, 8, 128), jnp.float32),
            jax.ShapeDtypeStruct((num_row_tiles, 8, 128), jnp.float32),
        ),
        grid_spec=pltpu.PrefetchScalarGridSpec(
            num_scalar_prefetch=0,
            grid=(num_row_tiles, num_c_tiles),
            in_specs=[
                pl.BlockSpec((rt, c_tile), lambda i, c: (i, c)),
                # TODO(synk): these (rt, 1) per-row blocks are lane-sparse; routing
                # them through SMEM/scalar-prefetch was judged low priority.
                pl.BlockSpec((rt, 1), lambda i, c: (i, 0)),
                pl.BlockSpec((rt, 1), lambda i, c: (i, 0)),
            ],
            out_specs=[
                pl.BlockSpec((1, 8, 128), lambda i, c: (i, 0, 0)),
                pl.BlockSpec((1, 8, 128), lambda i, c: (i, 0, 0)),
            ],
            scratch_shapes=scratch,
        ),
        compiler_params=pltpu.CompilerParams(
            dimension_semantics=("parallel", "arbitrary"),
            vmem_limit_bytes=vmem_limit,
        ),
    )(logits_flat, xt, valid)

    # Two-level f32 reduction of the per-row-tile partials.
    total = jnp.sum(partial_sum[:, 0, 0])
    count = jnp.sum(partial_cnt[:, 0, 0])
    return total / jnp.maximum(count, jnp.float32(1.0))


def _reference_loss(logits, targets, ignore_index=0, label_smoothing=0.0):
    B, T, C = logits.shape
    x = logits.reshape(-1, C).astype(jnp.float32)
    t = targets.reshape(-1).astype(jnp.int32)
    logp = jax.nn.log_softmax(x, axis=-1)
    nll = -jnp.take_along_axis(logp, t[:, None], axis=-1)[:, 0]
    smooth = -jnp.mean(logp, axis=-1)
    per_row = (1.0 - label_smoothing) * nll + label_smoothing * smooth
    valid = (t != ignore_index).astype(jnp.float32)
    return jnp.sum(per_row * valid) / jnp.maximum(jnp.sum(valid), 1.0)


if __name__ == "__main__":
    key = jax.random.PRNGKey(0)
    k1, k2, k3, k4, k5, k6 = jax.random.split(key, 6)

    # Case 1: small f32 shapes matching the module's forward (B, T, C).
    B, T, C = 2, 8, 32
    logits = jax.random.normal(k1, (B, T, C), dtype=jnp.float32)
    targets = jax.random.randint(k2, (B, T), 0, C, dtype=jnp.int32)
    targets = targets.at[0, 0].set(0).at[1, 3].set(0)      # some ignore_index rows
    loss = jax.block_until_ready(
        attention_loss(logits, targets, ignore_index=0, label_smoothing=0.0))
    ref = _reference_loss(logits, targets, ignore_index=0, label_smoothing=0.0)
    assert jnp.allclose(loss, ref, atol=1e-5, rtol=1e-5), (loss, ref)

    # Case 2: bf16 logits + label smoothing + ragged class tiling (C=200 with a
    # 128-wide class tile -> in-kernel lane masking on the tail class tile).
    B2, T2, C2 = 2, 8, 200
    logits2 = jax.random.normal(k3, (B2, T2, C2), dtype=jnp.bfloat16)
    targets2 = jax.random.randint(k4, (B2, T2), 0, C2, dtype=jnp.int32)
    targets2 = targets2.at[0, 1].set(0)
    loss2 = jax.block_until_ready(
        attention_loss(logits2, targets2, ignore_index=0, label_smoothing=0.1,
                       max_class_tile=128))
    ref2 = _reference_loss(logits2, targets2, ignore_index=0, label_smoothing=0.1)
    assert jnp.allclose(loss2, ref2, atol=2e-3, rtol=2e-3), (loss2, ref2)

    # Case 3: ragged row count (N = 21, not a multiple of the row tile) + smoothing,
    # exercising the in-kernel row-validity masking of the tail row tile.
    B3, T3, C3 = 3, 7, 200
    logits3 = jax.random.normal(k5, (B3, T3, C3), dtype=jnp.float32)
    targets3 = jax.random.randint(k6, (B3, T3), 0, C3, dtype=jnp.int32)
    targets3 = targets3.at[2, 6].set(0)
    loss3 = jax.block_until_ready(
        attention_loss(logits3, targets3, ignore_index=0, label_smoothing=0.05,
                       row_tile=8, max_class_tile=128))
    ref3 = _reference_loss(logits3, targets3, ignore_index=0, label_smoothing=0.05)
    assert jnp.allclose(loss3, ref3, atol=1e-4, rtol=1e-4), (loss3, ref3)

    print("KERNEL_OK")
</pallas_src>

<mosaic_0001>
module attributes {stable_mosaic.version = 11 : i64} {
  func.func @_ce_kernel(%arg0: i32, %arg1: i32, %arg2: memref<16x32xf32, #tpu.memory_space<vmem>>, %arg3: memref<16x1xf32, #tpu.memory_space<vmem>>, %arg4: memref<16x1xf32, #tpu.memory_space<vmem>>, %arg5: memref<1x8x128xf32, #tpu.memory_space<vmem>>, %arg6: memref<1x8x128xf32, #tpu.memory_space<vmem>>, %arg7: memref<16x32xf32, #tpu.memory_space<vmem>>, %arg8: memref<16x32xf32, #tpu.memory_space<vmem>>) attributes {dimension_semantics = [#tpu.dimension_semantics<parallel>, #tpu.dimension_semantics<arbitrary>], iteration_bounds = array<i64: 1, 1>, scalar_prefetch = 0 : i64, scratch_operands = 2 : i64, tpu.core_type = #tpu.core_type<tc>, window_params = [{transform_indices = @transform_0, window_bounds = array<i64: 16, 32>}, {transform_indices = @transform_1, window_bounds = array<i64: 16, 1>}, {transform_indices = @transform_2, window_bounds = array<i64: 16, 1>}, {transform_indices = @transform_3, window_bounds = array<i64: 1, 8, 128>}, {transform_indices = @transform_4, window_bounds = array<i64: 1, 8, 128>}]} {
    %c0_i32 = arith.constant 0 : i32
    %0 = arith.cmpi eq, %arg1, %c0_i32 : i32
    %1 = arith.extui %0 : i1 to i32
    %c0_i32_0 = arith.constant 0 : i32
    %2 = arith.cmpi ne, %1, %c0_i32_0 : i32
    scf.if %2 {
      %cst = arith.constant -1.000000e+30 : f32
      %19 = vector.broadcast %cst : f32 to vector<16x32xf32>
      %c0_14 = arith.constant 0 : index
      %c0_15 = arith.constant 0 : index
      %20 = vector.load %arg7[%c0_14, %c0_15] : memref<16x32xf32, #tpu.memory_space<vmem>>, vector<16x32xf32>
      tpu.vector_store %arg7[%c0_14, %c0_15], %19 {strides = array<i32>} : memref<16x32xf32, #tpu.memory_space<vmem>>, vector<16x32xf32>,
      %cst_16 = arith.constant 0.000000e+00 : f32
      %21 = vector.broadcast %cst_16 : f32 to vector<16x32xf32>
      %c0_17 = arith.constant 0 : index
      %c0_18 = arith.constant 0 : index
      %22 = vector.load %arg8[%c0_17, %c0_18] : memref<16x32xf32, #tpu.memory_space<vmem>>, vector<16x32xf32>
      tpu.vector_store %arg8[%c0_17, %c0_18], %21 {strides = array<i32>} : memref<16x32xf32, #tpu.memory_space<vmem>>, vector<16x32xf32>,
    } else {
    }
    %c0 = arith.constant 0 : index
    %c0_1 = arith.constant 0 : index
    %3 = vector.load %arg7[%c0, %c0_1] : memref<16x32xf32, #tpu.memory_space<vmem>>, vector<16x32xf32>
    %c0_2 = arith.constant 0 : index
    %c0_3 = arith.constant 0 : index
    %4 = vector.load %arg2[%c0_2, %c0_3] : memref<16x32xf32, #tpu.memory_space<vmem>>, vector<16x32xf32>
    %5 = arith.maximumf %3, %4 : vector<16x32xf32>
    %c0_4 = arith.constant 0 : index
    %c0_5 = arith.constant 0 : index
    %6 = vector.load %arg7[%c0_4, %c0_5] : memref<16x32xf32, #tpu.memory_space<vmem>>, vector<16x32xf32>
    tpu.vector_store %arg7[%c0_4, %c0_5], %5 {strides = array<i32>} : memref<16x32xf32, #tpu.memory_space<vmem>>, vector<16x32xf32>,
    %c0_6 = arith.constant 0 : index
    %c0_7 = arith.constant 0 : index
    %7 = vector.load %arg8[%c0_6, %c0_7] : memref<16x32xf32, #tpu.memory_space<vmem>>, vector<16x32xf32>
    %8 = arith.subf %3, %5 : vector<16x32xf32>
    %9 = math.exp %8 : vector<16x32xf32>
    %10 = arith.mulf %7, %9 : vector<16x32xf32>
    %c0_8 = arith.constant 0 : index
    %c0_9 = arith.constant 0 : index
    %11 = vector.load %arg2[%c0_8, %c0_9] : memref<16x32xf32, #tpu.memory_space<vmem>>, vector<16x32xf32>
    %12 = arith.subf %11, %5 : vector<16x32xf32>
    %13 = math.exp %12 : vector<16x32xf32>
    %14 = arith.addf %10, %13 : vector<16x32xf32>
    %c0_10 = arith.constant 0 : index
    %c0_11 = arith.constant 0 : index
    %15 = vector.load %arg8[%c0_10, %c0_11] : memref<16x32xf32, #tpu.memory_space<vmem>>, vector<16x32xf32>
    tpu.vector_store %arg8[%c0_10, %c0_11], %14 {strides = array<i32>} : memref<16x32xf32, #tpu.memory_space<vmem>>, vector<16x32xf32>,
    %c0_i32_12 = arith.constant 0 : i32
    %16 = arith.cmpi eq, %arg1, %c0_i32_12 : i32
    %17 = arith.extui %16 : i1 to i32
    %c0_i32_13 = arith.constant 0 : i32
    %18 = arith.cmpi ne, %17, %c0_i32_13 : i32
    scf.if %18 {
      %c0_14 = arith.constant 0 : index
      %c0_15 = arith.constant 0 : index
      %19 = vector.load %arg7[%c0_14, %c0_15] : memref<16x32xf32, #tpu.memory_space<vmem>>, vector<16x32xf32>
      %cst = arith.constant dense<0xFF800000> : vector<16xf32>
      %20 = vector.multi_reduction <maximumf>, %19, %cst [1] : vector<16x32xf32> to vector<16xf32>
      %21 = vector.shape_cast %20 : vector<16xf32> to vector<16x1xf32>
      %c0_16 = arith.constant 0 : index
      %c0_17 = arith.constant 0 : index
      %22 = vector.load %arg8[%c0_16, %c0_17] : memref<16x32xf32, #tpu.memory_space<vmem>>, vector<16x32xf32>
      %23 = vector.broadcast %21 : vector<16x1xf32> to vector<16x32xf32>
      %24 = arith.subf %19, %23 : vector<16x32xf32>
      %25 = math.exp %24 : vector<16x32xf32>
      %26 = arith.mulf %22, %25 : vector<16x32xf32>
      %cst_18 = arith.constant dense<0.000000e+00> : vector<16xf32>
      %27 = vector.multi_reduction <add>, %26, %cst_18 [1] : vector<16x32xf32> to vector<16xf32>
      %28 = vector.shape_cast %27 : vector<16xf32> to vector<16x1xf32>
      %29 = math.log %28 : vector<16x1xf32>
      %30 = arith.addf %21, %29 : vector<16x1xf32>
      %c0_19 = arith.constant 0 : index
      %c0_20 = arith.constant 0 : index
      %31 = vector.load %arg3[%c0_19, %c0_20] : memref<16x1xf32, #tpu.memory_space<vmem>>, vector<16x1xf32>
      %32 = arith.subf %30, %31 : vector<16x1xf32>
      %c0_21 = arith.constant 0 : index
      %c0_22 = arith.constant 0 : index
      %33 = vector.load %arg4[%c0_21, %c0_22] : memref<16x1xf32, #tpu.memory_space<vmem>>, vector<16x1xf32>
      %cst_23 = arith.constant 5.000000e-01 : f32
      %34 = vector.broadcast %cst_23 : f32 to vector<16x1xf32>
      %35 = arith.cmpf ogt, %33, %34 : vector<16x1xf32>
      %cst_24 = arith.constant 0.000000e+00 : f32
      %36 = vector.broadcast %cst_24 : f32 to vector<16x1xf32>
      %37 = arith.select %35, %32, %36 : vector<16x1xi1>, vector<16x1xf32>
      %38 = vector.shape_cast %37 : vector<16x1xf32> to vector<1x16x1xf32>
      %cst_25 = arith.constant dense<0.000000e+00> : vector<1xf32>
      %39 = vector.multi_reduction <add>, %38, %cst_25 [1, 2] : vector<1x16x1xf32> to vector<1xf32>
      %40 = vector.shape_cast %39 : vector<1xf32> to vector<1x1x1xf32>
      %41 = vector.extract %40[0, 0, 0] : f32 from vector<1x1x1xf32>
      %42 = vector.shape_cast %33 : vector<16x1xf32> to vector<1x16x1xf32>
      %cst_26 = arith.constant dense<0.000000e+00> : vector<1xf32>
      %43 = vector.multi_reduction <add>, %42, %cst_26 [1, 2] : vector<1x16x1xf32> to vector<1xf32>
      %44 = vector.shape_cast %43 : vector<1xf32> to vector<1x1x1xf32>
      %45 = vector.extract %44[0, 0, 0] : f32 from vector<1x1x1xf32>
      %46 = vector.broadcast %41 : f32 to vector<1x8x128xf32>
      %c0_27 = arith.constant 0 : index
      %c0_28 = arith.constant 0 : index
      %c0_29 = arith.constant 0 : index
      %47 = vector.load %arg5[%c0_27, %c0_28, %c0_29] : memref<1x8x128xf32, #tpu.memory_space<vmem>>, vector<1x8x128xf32>
      tpu.vector_store %arg5[%c0_27, %c0_28, %c0_29], %46 {strides = array<i32>} : memref<1x8x128xf32, #tpu.memory_space<vmem>>, vector<1x8x128xf32>,
      %48 = vector.broadcast %45 : f32 to vector<1x8x128xf32>
      %c0_30 = arith.constant 0 : index
      %c0_31 = arith.constant 0 : index
      %c0_32 = arith.constant 0 : index
      %49 = vector.load %arg6[%c0_30, %c0_31, %c0_32] : memref<1x8x128xf32, #tpu.memory_space<vmem>>, vector<1x8x128xf32>
      tpu.vector_store %arg6[%c0_30, %c0_31, %c0_32], %48 {strides = array<i32>} : memref<1x8x128xf32, #tpu.memory_space<vmem>>, vector<1x8x128xf32>,
    } else {
    }
    return
  }
  func.func @transform_0(%arg0: i32, %arg1: i32) -> (i32, i32) {
    %c0_i32 = arith.constant 0 : i32
    return %arg0, %arg1 : i32, i32
  }
  func.func @transform_1(%arg0: i32, %arg1: i32) -> (i32, i32) {
    %c0_i32 = arith.constant 0 : i32
    %c0_i32_0 = arith.constant 0 : i32
    return %arg0, %c0_i32 : i32, i32
  }
  func.func @transform_2(%arg0: i32, %arg1: i32) -> (i32, i32) {
    %c0_i32 = arith.constant 0 : i32
    %c0_i32_0 = arith.constant 0 : i32
    return %arg0, %c0_i32 : i32, i32
  }
  func.func @transform_3(%arg0: i32, %arg1: i32) -> (i32, i32, i32) {
    %c0_i32 = arith.constant 0 : i32
    %c0_i32_0 = arith.constant 0 : i32
    %c0_i32_1 = arith.constant 0 : i32
    return %arg0, %c0_i32, %c0_i32_0 : i32, i32, i32
  }
  func.func @transform_4(%arg0: i32, %arg1: i32) -> (i32, i32, i32) {
    %c0_i32 = arith.constant 0 : i32
    %c0_i32_0 = arith.constant 0 : i32
    %c0_i32_1 = arith.constant 0 : i32
    return %arg0, %c0_i32, %c0_i32_0 : i32, i32, i32
  }
}

</mosaic_0001>

<bundles_post_ra>
// kernel: tpu_custom_call.1
= control target key start
LH: loop header
LB: loop body
LE: loop exit
PB: predicated region body
PF: predicated region fallthrough
CT: control target
= control target key end

     0   :  { %10 = vsyncpa [#allocation5], 0  ;;  %vm22_vm0 = vcmask 261120   ;;  %v230_v0 = vmov -1e+30   ;;  %s324_s0 = inlined_call_operand.vmem [shape: f32[16,32], index: 0, kind: input, shape index: {}]   ;;  %s325_s1 = inlined_call_operand.vmem [shape: f32[16,1], index: 1, kind: input, shape index: {}]   ;;  %s326_s2 = inlined_call_operand.vmem [shape: f32[16,1], index: 2, kind: input, shape index: {}]   ;;  %s327_s3 = inlined_call_operand.hbm [shape: f32[1,8,128], index: 3, kind: output, shape index: {0}]   ;;  %s328_s4 = inlined_call_operand.hbm [shape: f32[1,8,128], index: 4, kind: output, shape index: {1}]  }
   0x1   :  { %23 = vst.msk [vmem:[#allocation2] sm:$0xff] %vm22_vm0, %v230_v0  ;;  %24 = vst.msk [vmem:[#allocation2 + $0x8] sm:$0xff] %vm22_vm0, %v230_v0 }
   0x2   :  { %11 = vsyncpa [#allocation7], 0  ;;  %v29_v1 = vld [vmem:[%s324_s0] sm:$0xff]  ;;  %v30_v2 = vld [vmem:[%s324_s0 + $0x8] sm:$0xff]  ;;  %v231_v19 = vmov 0.0   ;;  %vm101_vm1 = vcmask 7168  }
   0x3   :  { %25 = vst.msk [vmem:[#allocation3] sm:$0xff] %vm22_vm0, %v231_v19  ;;  %26 = vst.msk [vmem:[#allocation3 + $0x8] sm:$0xff] %vm22_vm0, %v231_v19  ;;  %v95_v44 = vld [vmem:[%s326_s2] sm:$0xff]  ;;  %v96_v45 = vld [vmem:[%s326_s2 + $0x8] sm:$0xff]  ;;  %s233_s26 = smov [#allocation6]  }
   0x4   :  { %v114_v46 = vsel %vm101_vm1, %v95_v44, 0.0  ;;  %v115_v47 = vsel %vm101_vm1, %v96_v45, 0.0  ;;  %v91_v53 = vld [vmem:[%s325_s1] sm:$0xff]  ;;  %v92_v58 = vld [vmem:[%s325_s1 + $0x8] sm:$0xff]  ;;  %vm97_vm2 = vcmp.gt.f32.partialorder %v95_v44, 0.5  ;;  %vm98_vm3 = vcmp.gt.f32.partialorder %v96_v45, 0.5 }
   0x5   :  { %v116_v48 = vadd.f32 %v115_v47, %v114_v46  ;;  %s232_s1 = smov [#allocation4]   ;;  %s146_s27 = sshll.u32 %s233_s26, 4  ;;  %s293_s27 = int_to_ptr.vmem [resolvable:$true] %s146_s27 }
   0x6   :  { %s136_s25 = sshll.u32 %s232_s1, 4  ;;  %s137_s25 = int_to_ptr.vmem [resolvable:$true] %s136_s25 }
   0x7   :  { %s182_s30 = scalar_lea.vmem %s137_s25, 128  ;;  %p187_p1 = scmp.lt.s32.totalorder %s137_s25, %s137_s25 }
   0x8   :  { %v27_v3 = vld [vmem:[#allocation2] sm:$0xff]  ;;  %v28_v4 = vld [vmem:[#allocation2 + $0x8] sm:$0xff]  ;;  %p183_p0 = scmp.ne.s32.totalorder %s137_s25, %s182_s30  ;;  %p188_p2 = scmp.lt.s32.totalorder %s182_s30, %s182_s30 }
   0x9   :  { %v31_v5 = vmax.f32 %v27_v3, %v29_v1  ;;  %v32_v6 = vmax.f32 %v28_v4, %v30_v2 }
   0xa   :  { %v36_v22 = vld [vmem:[#allocation3] sm:$0xff]  ;;  %v37_v27 = vld [vmem:[#allocation3 + $0x8] sm:$0xff]  ;;  %p189_p3 = por %p188_p2, %p187_p1 }
   0xb   :  { %34 = vst.msk [vmem:[#allocation2] sm:$0xff] %vm22_vm0, %v31_v5  ;;  %35 = vst.msk [vmem:[#allocation2 + $0x8] sm:$0xff] %vm22_vm0, %v32_v6  ;;  %v38_v7 = vsub.f32 %v27_v3, %v31_v5  ;;  %v48_v8 = vsub.f32 %v29_v1, %v31_v5  ;;  %v39_v13 = vsub.f32 %v28_v4, %v32_v6 }
   0xc   :  { %v49_v16 = vsub.f32 %v30_v2, %v32_v6  ;;  %p190_p4 = pnand %p189_p3, %p183_p0 }
   0xd   :  { %v40_v12 = vmul.f32 1.442695, %v38_v7  ;;  %v50_v15 = vmul.f32 1.442695, %v48_v8  ;;  %v42_v17 = vmul.f32 1.442695, %v39_v13 }
   0xe   :  { %v52_v18 = vmul.f32 1.442695, %v49_v16 }
   0xf   :  { %166 = vpow2.f32 %v40_v12 }
  0x10   :  { %168 = vpow2.f32 %v50_v15 }
  0x11   :  { %170 = vpow2.f32 %v42_v17 }
  0x12   :  { %v61_v9 = vld [vmem:[#allocation2] sm:$0xff]  ;;  %v62_v10 = vld [vmem:[#allocation2 + $0x8] sm:$0xff]  ;;  %172 = vpow2.f32 %v52_v18 }
  0x13   :  { %v63_v11 = vsel %vm22_vm0, %v61_v9, -inf  ;;  %v66_v14 = vsel %vm22_vm0, %v62_v10, -inf }
  0x14   :  { %64 = vmax.xlane.f32.xlu0 %v63_v11 }
  0x18   :  { %67 = vmax.xlane.f32.xlu0 %v66_v14 }
  0x19   :  { %v167_v20 = vpop.eup %166 }
  0x1a   :  { %v169_v21 = vpop.eup %168  ;;  %v44_v23 = vmul.f32 %v167_v20, %v36_v22 }
  0x1b   :  { %v171_v24 = vpop.eup %170 }
  0x1c   :  { %v54_v25 = vadd.f32 %v169_v21, %v44_v23  ;;  %v173_v26 = vpop.eup %172  ;;  %v45_v28 = vmul.f32 %v171_v24, %v37_v27 }
  0x1e   :  { %56 = vst.msk [vmem:[#allocation3] sm:$0xff] %vm22_vm0, %v54_v25  ;;  %v55_v29 = vadd.f32 %v173_v26, %v45_v28 }
  0x20   :  { %57 = vst.msk [vmem:[#allocation3 + $0x8] sm:$0xff] %vm22_vm0, %v55_v29 }
  0x25   :  { %v69_v36 = vld [vmem:[#allocation3] sm:$0xff] }
  0x27   :  { %v70_v39 = vld [vmem:[#allocation3 + $0x8] sm:$0xff] }
  0xa1   :  { %v65_v30 = vpop.xlane.xlu0 %64 }
  0xa2   :  { %v71_v31 = vsub.f32 %v61_v9, %v65_v30 }
  0xa4   :  { %v73_v32 = vmul.f32 1.442695, %v71_v31 }
  0xa5   :  { %v68_v33 = vpop.xlane.xlu0 %67 }
  0xa6   :  { %174 = vpow2.f32 %v73_v32  ;;  %v72_v34 = vsub.f32 %v62_v10, %v68_v33 }
  0xa8   :  { %v75_v35 = vmul.f32 1.442695, %v72_v34 }
  0xaa   :  { %176 = vpow2.f32 %v75_v35 }
  0xb0   :  { %v175_v37 = vpop.eup %174 }
  0xb1   :  { %v77_v38 = vmul.f32 %v175_v37, %v69_v36 }
  0xb3   :  { %v79_v40 = vsel %vm22_vm0, %v77_v38, 0.0 }
  0xb4   :  { %v177_v41 = vpop.eup %176  ;;  %80 = vadd.xlane.f32.xlu1 %v79_v40 }
  0xb5   :  { %v78_v42 = vmul.f32 %v177_v41, %v70_v39 }
  0xb7   :  { %v82_v43 = vsel %vm22_vm0, %v78_v42, 0.0 }
  0xb8   :  { %83 = vadd.xlane.f32.xlu1 %v82_v43 }
  0xbc   :  { %117 = vadd.xlane.f32.xlu1 %v116_v48 }
 0x141   :  { %v81_v49 = vpop.xlane.xlu1 %80 }
 0x142   :  { %178 = vlog2.f32 %v81_v49 }
 0x145   :  { %v84_v50 = vpop.xlane.xlu1 %83 }
 0x146   :  { %180 = vlog2.f32 %v84_v50 }
 0x149   :  { %v118_v2 = vpop.xlane.xlu1 %117 }
 0x14a   :  { %v119_v3 = vrot.slane %v118_v2, 4 }
 0x14c   :  { %v179_v51 = vpop.eup %178  ;;  %v120_v4 = vadd.f32 %v119_v3, %v118_v2 }
 0x14d   :  { %v86_v52 = vmul.f32 0.6931472, %v179_v51 }
 0x14e   :  { %v121_v5 = vrot.slane %v120_v4, 2 }
 0x14f   :  { %v89_v54 = vadd.f32 %v86_v52, %v65_v30 }
 0x150   :  { %v181_v55 = vpop.eup %180  ;;  %v122_v9 = vadd.f32 %v121_v5, %v120_v4 }
 0x151   :  { %v88_v56 = vmul.f32 0.6931472, %v181_v55  ;;  %v93_v57 = vsub.f32 %v89_v54, %v91_v53 }
 0x152   :  { %v123_v12 = vrot.slane %v122_v9, 1 }
 0x153   :  { %v90_v59 = vadd.f32 %v88_v56, %v68_v33  ;;  %v99_v61 = vsel %vm97_vm2, %v93_v57, 0.0 }
 0x154   :  { %v102_v63 = vsel %vm101_vm1, %v99_v61, 0.0  ;;  %v124_v15 = vadd.f32 %v123_v12, %v122_v9 }
 0x155   :  { %v94_v60 = vsub.f32 %v90_v59, %v92_v58 }
 0x157   :  { %v100_v62 = vsel %vm98_vm3, %v94_v60, 0.0 }
 0x158   :  { %v103_v0 = vsel %vm101_vm1, %v100_v62, 0.0 }
 0x159   :  { %v104_v1 = vadd.f32 %v103_v0, %v102_v63 }
 0x15b   :  { %105 = vadd.xlane.f32.xlu0 %v104_v1 }
 0x1e8   :  { %v106_v6 = vpop.xlane.xlu0 %105 }
 0x1e9   :  { %v107_v7 = vrot.slane %v106_v6, 4 }
 0x1eb   :  { %v108_v8 = vadd.f32 %v107_v7, %v106_v6 }
 0x1ed   :  { %v109_v10 = vrot.slane %v108_v8, 2 }
 0x1ef   :  { %v110_v11 = vadd.f32 %v109_v10, %v108_v8 }
 0x1f1   :  { %v111_v13 = vrot.slane %v110_v11, 1 }
 0x1f3   :  { %v112_v14 = vadd.f32 %v111_v13, %v110_v11 }
 0x1f5   :  { %158 = vpush %v112_v14 }
 0x1f6   :  { %160 = vpush %v124_v15 }
 0x226   :  { %s159_s28 = spop %158 }
 0x227   :  { %v126_v16 = vstv %s159_s28  ;;  %s161_s29 = spop %160 }
 0x228   :  { %127 = vst [vmem:[#allocation4] sm:$0xff] %v126_v16  ;;  %v128_v17 = vstv %s161_s29 }
 0x229   :  { %129 = vst [vmem:[#allocation6] sm:$0xff] %v128_v17 }
 0x22a   :  { %193 = shalt.err (!%p190_p4)
}
 0x22b   :  { %s194_s7 = scalar_lea.hbm %s327_s3, 128 }
 0x22c   :  { %p195_p5 = scmp.ne.s32.totalorder %s327_s3, %s194_s7  ;;  %p198_p6 = scmp.lt.u32.totalorder %s194_s7, %s327_s3 }
 0x22e   :  { %p200_p7 = pnand %p198_p6, %p195_p5 }
 0x230   :  { %203 = shalt.err (!%p200_p7)
}
 0x231   :  { %139 = dma.vmem_to_hbm [thread:$0]  %s137_s25, 128, %s327_s3, [#allocation5]  }
 0x232   :  { %s204_s14 = scalar_lea.vmem %s293_s27, 128  ;;  %p209_p9 = scmp.lt.s32.totalorder %s293_s27, %s293_s27 }
 0x233   :  { %p205_p8 = scmp.ne.s32.totalorder %s293_s27, %s204_s14  ;;  %p210_p10 = scmp.lt.s32.totalorder %s204_s14, %s204_s14 }
 0x235   :  { %p211_p11 = por %p210_p10, %p209_p9 }
 0x237   :  { %p212_p12 = pnand %p211_p11, %p205_p8 }
 0x239   :  { %215 = shalt.err (!%p212_p12)
}
 0x23a   :  { %s216_s17 = scalar_lea.hbm %s328_s4, 128 }
 0x23b   :  { %p217_p13 = scmp.ne.s32.totalorder %s328_s4, %s216_s17  ;;  %p220_p0 = scmp.lt.u32.totalorder %s216_s17, %s328_s4 }
 0x23d   :  { %p222_p1 = pnand %p220_p0, %p217_p13 }
 0x23f   :  { %225 = shalt.err (!%p222_p1)
}
 0x240   :  { %149 = dma.vmem_to_hbm [thread:$0]  %s293_s27, 128, %s328_s4, [#allocation7]  }
 0x241   :  { %226 = dma.done.wait [#allocation5], 128  }
 0x242   :  { %227 = vsyncadd [#allocation5], 4294967168 }
 0x243   :  { %228 = dma.done.wait [#allocation7], 128  }
 0x244   :  { %229 = vsyncadd [#allocation7], 4294967168 }
 0x245   :  { %156 = vsyncpa [#allocation5], 1 }
 0x246   :  { %157 = vsyncpa [#allocation7], 1 }

</bundles_post_ra>
